<compile_context>
chip_gen: v7x
topology: tpu7x:2x2x1
jax: 0.10.0
libtpu: 0.0.40
codegen_flags: <defaults>
</compile_context>

<pallas_src>
import functools

import jax
import jax.numpy as jnp
from jax import lax
from jax.experimental import pallas as pl
from jax.experimental.pallas import tpu as pltpu

_LANES = 128
_MAX_BLOCK_ROWS = 1024          # 1024 x 128 x 4 B = 512 KiB per f32 block
_INV_2_23 = float(1.0 / (1 << 23))
_SQRT2 = 1.4142135623730951


def _mix32(x):
    """lowbias32-style 32-bit avalanche mixer (uint32 in, uint32 out)."""
    x = x ^ (x >> jnp.uint32(16))
    x = x * jnp.uint32(0x7FEB352D)
    x = x ^ (x >> jnp.uint32(15))
    x = x * jnp.uint32(0x846CA68B)
    x = x ^ (x >> jnp.uint32(16))
    return x


def _erfinv_f32(x):
    """Giles (2012) single-precision erfinv: 1 log + 1 sqrt, FMA polys, no divide."""
    w = -jnp.log((1.0 - x) * (1.0 + x))

    # Central branch (w < 5): covers all but ~1e-3 of uniform draws.
    wc = w - 2.5
    p = jnp.float32(2.81022636e-08)
    p = jnp.float32(3.43273939e-07) + p * wc
    p = jnp.float32(-3.5233877e-06) + p * wc
    p = jnp.float32(-4.39150654e-06) + p * wc
    p = jnp.float32(0.00021858087) + p * wc
    p = jnp.float32(-0.00125372503) + p * wc
    p = jnp.float32(-0.00417768164) + p * wc
    p = jnp.float32(0.246640727) + p * wc
    p = jnp.float32(1.50140941) + p * wc

    # Tail branch (w >= 5): rare, keeps |noise| accurate out to ~5.4 sigma.
    wt = jnp.sqrt(w) - 3.0
    q = jnp.float32(-0.000200214257)
    q = jnp.float32(0.000100950558) + q * wt
    q = jnp.float32(0.00134934322) + q * wt
    q = jnp.float32(-0.00367342844) + q * wt
    q = jnp.float32(0.00573950773) + q * wt
    q = jnp.float32(-0.0076224613) + q * wt
    q = jnp.float32(0.00943887047) + q * wt
    q = jnp.float32(1.00167406) + q * wt
    q = jnp.float32(2.83297682) + q * wt

    return jnp.where(w < 5.0, p, q) * x


def _gaussian_noise_kernel(seed_ref, x_ref, o_ref, *, use_hw_prng):
    block_rows, block_lanes = x_ref.shape

    if use_hw_prng:
        # Hardware PRNG: re-seed per tile (program_id folded in) so results are
        # deterministic and independent of how grid steps map to cores.
        pltpu.prng_seed(seed_ref[0], pl.program_id(0))
        bits = pltpu.bitcast(
            pltpu.prng_random_bits((block_rows, block_lanes)), jnp.uint32)
    else:
        # Non-TPU / interpret fallback: counter-based hash keyed off the
        # absolute element index (decorrelates tiles, core-assignment agnostic).
        row0 = pl.program_id(0) * block_rows
        r = lax.broadcasted_iota(jnp.int32, (block_rows, block_lanes), 0)
        c = lax.broadcasted_iota(jnp.int32, (block_rows, block_lanes), 1)
        idx = ((row0 + r) * block_lanes + c).astype(jnp.uint32)
        key = _mix32(seed_ref[0].astype(jnp.uint32) ^ jnp.uint32(0x9E3779B9))
        bits = _mix32(idx ^ key)

    # 23 random bits -> uniform strictly inside (0, 1) -> x in (-1, 1).
    mant = (bits >> jnp.uint32(9)).astype(jnp.int32)        # fits in int32
    u = (mant.astype(jnp.float32) + 0.5) * jnp.float32(_INV_2_23)
    v = 2.0 * u - 1.0
    noise = jnp.float32(_SQRT2) * _erfinv_f32(v)

    # Add in f32, store back in the I/O dtype (bf16 stays bf16 over HBM).
    o_ref[...] = (x_ref[...].astype(jnp.float32) + noise).astype(o_ref.dtype)


def gaussian_noise(x, seed=0, use_hw_prng=None):
    """x: any-shape float array -> x + N(0, 1) noise (elementwise)."""
    if use_hw_prng is None:
        use_hw_prng = jax.default_backend() == "tpu"

    orig_shape = x.shape
    orig_dtype = x.dtype
    n = x.size

    # Lane-dense slab: pad only to a multiple of 128 (needed for the reshape).
    rows = pl.cdiv(n, _LANES)
    padded = rows * _LANES
    flat = x.reshape(-1)
    if padded != n:
        flat = jnp.pad(flat, (0, padded - n))
    x2d = flat.reshape(rows, _LANES)
    seed_arr = jnp.asarray([seed], dtype=jnp.int32)

    # Block rows: multiple of 8, capped at _MAX_BLOCK_ROWS, and small enough to
    # give >= 2 grid steps when possible (keeps both v7x TensorCores busy).
    if rows <= 8:
        block_rows = rows                         # single full-array block
    else:
        half_rows = -(-rows // 2)
        block_rows = min(_MAX_BLOCK_ROWS, ((half_rows + 7) // 8) * 8)
    grid = (pl.cdiv(rows, block_rows),)

    itemsize = jnp.dtype(orig_dtype).itemsize
    cost = pl.CostEstimate(
        flops=45 * padded,            # erfinv polynomials + uniform construction
        transcendentals=2 * padded,   # 1 log + 1 sqrt per element
        bytes_accessed=2 * padded * itemsize,
    )

    out2d = pl.pallas_call(
        functools.partial(_gaussian_noise_kernel, use_hw_prng=use_hw_prng),
        out_shape=jax.ShapeDtypeStruct((rows, _LANES), orig_dtype),
        grid_spec=pltpu.PrefetchScalarGridSpec(
            num_scalar_prefetch=1,
            grid=grid,
            in_specs=[pl.BlockSpec((block_rows, _LANES),
                                   lambda i, seed_ref: (i, 0))],
            out_specs=pl.BlockSpec((block_rows, _LANES),
                                   lambda i, seed_ref: (i, 0)),
        ),
        compiler_params=pltpu.CompilerParams(
            dimension_semantics=("parallel",),
            vmem_limit_bytes=32 * 1024 * 1024,
        ),
        cost_estimate=cost,
    )(seed_arr, x2d)

    if padded != n:
        return out2d.reshape(-1)[:n].reshape(orig_shape)
    return out2d.reshape(orig_shape)


class GaussianNoise:
    """JAX/Pallas port of the PyTorch GaussianNoise module."""

    def __init__(self, stddev):
        # Stored but unused in forward, matching the PyTorch reference exactly.
        self.stddev = stddev

    def __call__(self, x, seed=0):
        return gaussian_noise(x, seed)


if __name__ == "__main__":
    key = jax.random.PRNGKey(0)
    # Small NCHW input consistent with how the module is used (conv features).
    x = jax.random.normal(key, (2, 4, 16, 16), dtype=jnp.float32)

    module = GaussianNoise(stddev=1.0)
    out = module(x, seed=1234)
    out = jax.block_until_ready(out)

    assert out.shape == x.shape and out.dtype == x.dtype
    noise = out - x
    assert bool(jnp.all(jnp.isfinite(noise)))
    # Loose sanity check that the added noise is ~N(0, 1) over 2048 samples.
    m = float(jnp.mean(noise))
    s = float(jnp.std(noise))
    assert abs(m) < 0.15, f"noise mean off: {m}"
    assert 0.7 < s < 1.3, f"noise std off: {s}"

    print("KERNEL_OK")
</pallas_src>

<mosaic_0001>
module attributes {stable_mosaic.version = 11 : i64} {
  func.func @_gaussian_noise_kernel(%arg0: i32, %arg1: memref<1xi32, #tpu.memory_space<smem>>, %arg2: memref<8x128xf32, #tpu.memory_space<vmem>>, %arg3: memref<8x128xf32, #tpu.memory_space<vmem>>) attributes {dimension_semantics = [#tpu.dimension_semantics<parallel>], iteration_bounds = array<i64: 2>, scalar_prefetch = 1 : i64, scratch_operands = 0 : i64, tpu.core_type = #tpu.core_type<tc>, window_params = [{transform_indices = @transform_0, window_bounds = array<i64: 8, 128>}, {transform_indices = @transform_1, window_bounds = array<i64: 8, 128>}]} {
    %c8_i32 = arith.constant 8 : i32
    %0 = arith.muli %arg0, %c8_i32 : i32
    %1 = tpu.iota {dimensions = array<i32: 0>} : vector<8x128xi32>
    %2 = tpu.iota {dimensions = array<i32: 1>} : vector<8x128xi32>
    %3 = vector.broadcast %0 : i32 to vector<8x128xi32>
    %4 = arith.addi %3, %1 : vector<8x128xi32>
    %c128_i32 = arith.constant 128 : i32
    %5 = vector.broadcast %c128_i32 : i32 to vector<8x128xi32>
    %6 = arith.muli %4, %5 : vector<8x128xi32>
    %7 = arith.addi %6, %2 : vector<8x128xi32>
    %c0 = arith.constant 0 : index
    %8 = memref.load %arg1[%c0] : memref<1xi32, #tpu.memory_space<smem>>
    %c-1640531527_i32 = arith.constant -1640531527 : i32
    %9 = arith.xori %8, %c-1640531527_i32 : i32
    %c16_i32 = arith.constant 16 : i32
    %10 = arith.shrui %9, %c16_i32 : i32
    %11 = arith.xori %9, %10 : i32
    %c2146121005_i32 = arith.constant 2146121005 : i32
    %12 = arith.muli %11, %c2146121005_i32 : i32
    %c15_i32 = arith.constant 15 : i32
    %13 = arith.shrui %12, %c15_i32 : i32
    %14 = arith.xori %12, %13 : i32
    %c-2073254261_i32 = arith.constant -2073254261 : i32
    %15 = arith.muli %14, %c-2073254261_i32 : i32
    %c16_i32_0 = arith.constant 16 : i32
    %16 = arith.shrui %15, %c16_i32_0 : i32
    %17 = arith.xori %15, %16 : i32
    %18 = vector.broadcast %17 : i32 to vector<8x128xi32>
    %19 = arith.xori %7, %18 : vector<8x128xi32>
    %c16_i32_1 = arith.constant 16 : i32
    %20 = vector.broadcast %c16_i32_1 : i32 to vector<8x128xi32>
    %21 = arith.shrui %19, %20 : vector<8x128xi32>
    %22 = arith.xori %19, %21 : vector<8x128xi32>
    %c2146121005_i32_2 = arith.constant 2146121005 : i32
    %23 = vector.broadcast %c2146121005_i32_2 : i32 to vector<8x128xi32>
    %24 = arith.muli %22, %23 : vector<8x128xi32>
    %c15_i32_3 = arith.constant 15 : i32
    %25 = vector.broadcast %c15_i32_3 : i32 to vector<8x128xi32>
    %26 = arith.shrui %24, %25 : vector<8x128xi32>
    %27 = arith.xori %24, %26 : vector<8x128xi32>
    %c-2073254261_i32_4 = arith.constant -2073254261 : i32
    %28 = vector.broadcast %c-2073254261_i32_4 : i32 to vector<8x128xi32>
    %29 = arith.muli %27, %28 : vector<8x128xi32>
    %c16_i32_5 = arith.constant 16 : i32
    %30 = vector.broadcast %c16_i32_5 : i32 to vector<8x128xi32>
    %31 = arith.shrui %29, %30 : vector<8x128xi32>
    %32 = arith.xori %29, %31 : vector<8x128xi32>
    %c9_i32 = arith.constant 9 : i32
    %33 = vector.broadcast %c9_i32 : i32 to vector<8x128xi32>
    %34 = arith.shrui %32, %33 : vector<8x128xi32>
    %35 = arith.sitofp %34 : vector<8x128xi32> to vector<8x128xf32>
    %cst = arith.constant 5.000000e-01 : f32
    %36 = vector.broadcast %cst : f32 to vector<8x128xf32>
    %37 = arith.addf %35, %36 : vector<8x128xf32>
    %cst_6 = arith.constant 1.1920929E-7 : f32
    %38 = vector.broadcast %cst_6 : f32 to vector<8x128xf32>
    %39 = arith.mulf %37, %38 : vector<8x128xf32>
    %cst_7 = arith.constant 2.000000e+00 : f32
    %40 = vector.broadcast %cst_7 : f32 to vector<8x128xf32>
    %41 = arith.mulf %40, %39 : vector<8x128xf32>
    %cst_8 = arith.constant 1.000000e+00 : f32
    %42 = vector.broadcast %cst_8 : f32 to vector<8x128xf32>
    %43 = arith.subf %41, %42 : vector<8x128xf32>
    %cst_9 = arith.constant 1.000000e+00 : f32
    %44 = vector.broadcast %cst_9 : f32 to vector<8x128xf32>
    %45 = arith.subf %44, %43 : vector<8x128xf32>
    %cst_10 = arith.constant 1.000000e+00 : f32
    %46 = vector.broadcast %cst_10 : f32 to vector<8x128xf32>
    %47 = arith.addf %46, %43 : vector<8x128xf32>
    %48 = arith.mulf %45, %47 : vector<8x128xf32>
    %49 = math.log %48 : vector<8x128xf32>
    %cst_11 = arith.constant 0.000000e+00 : f32
    %50 = vector.broadcast %cst_11 : f32 to vector<8x128xf32>
    %51 = arith.subf %50, %49 : vector<8x128xf32>
    %cst_12 = arith.constant 2.500000e+00 : f32
    %52 = vector.broadcast %cst_12 : f32 to vector<8x128xf32>
    %53 = arith.subf %51, %52 : vector<8x128xf32>
    %cst_13 = arith.constant 2.81022636E-8 : f32
    %54 = vector.broadcast %cst_13 : f32 to vector<8x128xf32>
    %55 = arith.mulf %54, %53 : vector<8x128xf32>
    %cst_14 = arith.constant 3.43273939E-7 : f32
    %56 = vector.broadcast %cst_14 : f32 to vector<8x128xf32>
    %57 = arith.addf %56, %55 : vector<8x128xf32>
    %58 = arith.mulf %57, %53 : vector<8x128xf32>
    %cst_15 = arith.constant -3.5233877E-6 : f32
    %59 = vector.broadcast %cst_15 : f32 to vector<8x128xf32>
    %60 = arith.addf %59, %58 : vector<8x128xf32>
    %61 = arith.mulf %60, %53 : vector<8x128xf32>
    %cst_16 = arith.constant -4.39150654E-6 : f32
    %62 = vector.broadcast %cst_16 : f32 to vector<8x128xf32>
    %63 = arith.addf %62, %61 : vector<8x128xf32>
    %64 = arith.mulf %63, %53 : vector<8x128xf32>
    %cst_17 = arith.constant 2.1858087E-4 : f32
    %65 = vector.broadcast %cst_17 : f32 to vector<8x128xf32>
    %66 = arith.addf %65, %64 : vector<8x128xf32>
    %67 = arith.mulf %66, %53 : vector<8x128xf32>
    %cst_18 = arith.constant -0.00125372503 : f32
    %68 = vector.broadcast %cst_18 : f32 to vector<8x128xf32>
    %69 = arith.addf %68, %67 : vector<8x128xf32>
    %70 = arith.mulf %69, %53 : vector<8x128xf32>
    %cst_19 = arith.constant -0.00417768164 : f32
    %71 = vector.broadcast %cst_19 : f32 to vector<8x128xf32>
    %72 = arith.addf %71, %70 : vector<8x128xf32>
    %73 = arith.mulf %72, %53 : vector<8x128xf32>
    %cst_20 = arith.constant 0.246640727 : f32
    %74 = vector.broadcast %cst_20 : f32 to vector<8x128xf32>
    %75 = arith.addf %74, %73 : vector<8x128xf32>
    %76 = arith.mulf %75, %53 : vector<8x128xf32>
    %cst_21 = arith.constant 1.50140941 : f32
    %77 = vector.broadcast %cst_21 : f32 to vector<8x128xf32>
    %78 = arith.addf %77, %76 : vector<8x128xf32>
    %79 = math.sqrt %51 : vector<8x128xf32>
    %cst_22 = arith.constant 3.000000e+00 : f32
    %80 = vector.broadcast %cst_22 : f32 to vector<8x128xf32>
    %81 = arith.subf %79, %80 : vector<8x128xf32>
    %cst_23 = arith.constant -2.00214257E-4 : f32
    %82 = vector.broadcast %cst_23 : f32 to vector<8x128xf32>
    %83 = arith.mulf %82, %81 : vector<8x128xf32>
    %cst_24 = arith.constant 1.00950558E-4 : f32
    %84 = vector.broadcast %cst_24 : f32 to vector<8x128xf32>
    %85 = arith.addf %84, %83 : vector<8x128xf32>
    %86 = arith.mulf %85, %81 : vector<8x128xf32>
    %cst_25 = arith.constant 0.00134934322 : f32
    %87 = vector.broadcast %cst_25 : f32 to vector<8x128xf32>
    %88 = arith.addf %87, %86 : vector<8x128xf32>
    %89 = arith.mulf %88, %81 : vector<8x128xf32>
    %cst_26 = arith.constant -0.00367342844 : f32
    %90 = vector.broadcast %cst_26 : f32 to vector<8x128xf32>
    %91 = arith.addf %90, %89 : vector<8x128xf32>
    %92 = arith.mulf %91, %81 : vector<8x128xf32>
    %cst_27 = arith.constant 0.00573950773 : f32
    %93 = vector.broadcast %cst_27 : f32 to vector<8x128xf32>
    %94 = arith.addf %93, %92 : vector<8x128xf32>
    %95 = arith.mulf %94, %81 : vector<8x128xf32>
    %cst_28 = arith.constant -0.0076224613 : f32
    %96 = vector.broadcast %cst_28 : f32 to vector<8x128xf32>
    %97 = arith.addf %96, %95 : vector<8x128xf32>
    %98 = arith.mulf %97, %81 : vector<8x128xf32>
    %cst_29 = arith.constant 0.00943887047 : f32
    %99 = vector.broadcast %cst_29 : f32 to vector<8x128xf32>
    %100 = arith.addf %99, %98 : vector<8x128xf32>
    %101 = arith.mulf %100, %81 : vector<8x128xf32>
    %cst_30 = arith.constant 1.00167406 : f32
    %102 = vector.broadcast %cst_30 : f32 to vector<8x128xf32>
    %103 = arith.addf %102, %101 : vector<8x128xf32>
    %104 = arith.mulf %103, %81 : vector<8x128xf32>
    %cst_31 = arith.constant 2.83297682 : f32
    %105 = vector.broadcast %cst_31 : f32 to vector<8x128xf32>
    %106 = arith.addf %105, %104 : vector<8x128xf32>
    %cst_32 = arith.constant 5.000000e+00 : f32
    %107 = vector.broadcast %cst_32 : f32 to vector<8x128xf32>
    %108 = arith.cmpf olt, %51, %107 : vector<8x128xf32>
    %109 = arith.select %108, %78, %106 : vector<8x128xi1>, vector<8x128xf32>
    %110 = arith.mulf %109, %43 : vector<8x128xf32>
    %cst_33 = arith.constant 1.41421354 : f32
    %111 = vector.broadcast %cst_33 : f32 to vector<8x128xf32>
    %112 = arith.mulf %111, %110 : vector<8x128xf32>
    %c0_34 = arith.constant 0 : index
    %c0_35 = arith.constant 0 : index
    %113 = vector.load %arg2[%c0_34, %c0_35] : memref<8x128xf32, #tpu.memory_space<vmem>>, vector<8x128xf32>
    %114 = arith.addf %113, %112 : vector<8x128xf32>
    %c0_36 = arith.constant 0 : index
    %c0_37 = arith.constant 0 : index
    %115 = vector.load %arg3[%c0_36, %c0_37] : memref<8x128xf32, #tpu.memory_space<vmem>>, vector<8x128xf32>
    tpu.vector_store %arg3[%c0_36, %c0_37], %114 {strides = array<i32>} : memref<8x128xf32, #tpu.memory_space<vmem>>, vector<8x128xf32>,
    return
  }
  func.func @transform_0(%arg0: i32, %arg1: memref<1xi32, #tpu.memory_space<smem>>) -> (i32, i32) {
    %c0_i32 = arith.constant 0 : i32
    %c0_i32_0 = arith.constant 0 : i32
    return %arg0, %c0_i32 : i32, i32
  }
  func.func @transform_1(%arg0: i32, %arg1: memref<1xi32, #tpu.memory_space<smem>>) -> (i32, i32) {
    %c0_i32 = arith.constant 0 : i32
    %c0_i32_0 = arith.constant 0 : i32
    return %arg0, %c0_i32 : i32, i32
  }
}

</mosaic_0001>

<bundles_post_ra>
// kernel: tpu_custom_call.1
= control target key start
LH: loop header
LB: loop body
LE: loop exit
PB: predicated region body
PF: predicated region fallthrough
CT: control target
= control target key end

     0   :  { %s660_s0 = inlined_call_operand.<no memory space> [shape: s32[1], index: 0, kind: input, shape index: {}]   ;;  %s661_s1 = inlined_call_operand.hbm [shape: f32[16,128], index: 1, kind: input, shape index: {}]   ;;  %s662_s2 = inlined_call_operand.hbm [shape: f32[16,128], index: 2, kind: output, shape index: {}]  }
   0x1   :  { %7 = sst [smem:[#allocation3]] %s660_s0 }
   0x2   :  { %8 = vsyncpa [#allocation5], 0 }
   0x3   :  { %10 = vsyncpa [#allocation5 + $0x1], 0 }
   0x4   :  { %11 = vsyncpa [#allocation6], 0 }
   0x5   :  { %13 = vsyncpa [#allocation6 + $0x1], 0  ;;  %s491_s11 = smov 0   ;;  %s493_s12 = smov 0  }
   0x6   :  { %s495_s13 = smov 0   ;;  %s497_s14 = smov 0  }
   0x7 LB: > { %s512_s0 = sadd.s32 4294967295, %s469_s14   ;;  %s307_s15 = sadd.s32 4294967294, %s469_s14   ;;  %s469_s14 = sphi %s497_s14, %s677_s14   ;;  %s465_s13 = sphi %s495_s13, %s676_s13   ;;  %s461_s12 = sphi %s493_s12, %s675_s12   ;;  %s457_s11 = sphi %s491_s11, %s674_s11  }
   0x8   : > { %s516_s16 = sadd.s32 1, %s469_s14   ;;  %s26_s17 = sadd.s32 1, %s465_s13 }
   0x9   : > { %s23_s18 = ssub.s32 %s469_s14, %s516_s16  ;;  %p33_p0 = scmp.ne.s32.totalorder %s465_s13, %s461_s12 }
   0xa   : > { %p24_p1 = scmp.eq.s32.totalorder %s23_s18, 0  ;;  %p34_p2 = scmp.eq.s32.totalorder %s469_s14, 0 }
   0xb   : > { %p39_p3 = scmp.ne.s32.totalorder %s461_s12, %s457_s11  ;;  %p40_p4 = scmp.eq.s32.totalorder %s512_s0, 0 }
   0xc   : > { %s528_s19 = scalar_select %p24_p1, %s465_s13, %s26_s17  }
   0xd   : > { %p530_p5 = por %p34_p2, %p33_p0  ;;  %p534_p6 = por %p40_p4, %p39_p3 }
   0xe   : > { %p63_p7 = scmp.eq.s32.totalorder %s512_s0, 1  ;;  %p69_p8 = scmp.eq.s32.totalorder %s307_s15, 1 }
   0xf   : > { %p335_p10 = scmp.lt.s32.totalorder %s469_s14, 2  ;;  %s89_s24 = sand.u32 1, %s465_s13  }
  0x10   : > { %p541_p11 = por %p63_p7, %p33_p0  ;;  %p545_p12 = por %p69_p8, %p39_p3 }
  0x11   : > { %s311_s25 = sshll.u32 %s469_s14, 7  ;;  %s310_s26 = sshll.u32 %s89_s24, 3 }
  0x12   : > { %s666_s22 = scalar_select %p541_p11, 1, 0 }
  0x13   : > { %s667_s23 = scalar_select %p545_p12, 1, 0 }
  0x14   : > { %s554_s29 = scalar_lea.hbm %s661_s1, %s311_s25  ;;  %s93_s30 = scalar_lea.vmem [#allocation4], %s310_s26 }
  0x15   : > { %s100_s3 = sshll.u32 %s93_s30, 4  ;;  %p558_p13 = pnand %p335_p10, %p530_p5  ;;  %s562_s3 = int_to_ptr.vmem [resolvable:$true] %s100_s3 }
  0x16   : > { %s90_s5 = scalar_lea.sflag [#allocation5], %s89_s24  ;;  %s373_s6 = scalar_lea.hbm %s554_s29, 128 }
  0x17   : > { %p374_p2 = scmp.ne.s32.totalorder %s554_s29, %s373_s6  ;;  %p375_p3 = pneg %p558_p13 }
  0x18   : > { %s378_s9 = scalar_lea.hbm %s661_s1, 256  ;;  %p379_p5 = scmp.lt.u32.totalorder %s554_s29, %s661_s1 }
  0x19   : > { %p376_p4 = pnand %p375_p3, %p374_p2  ;;  %p380_p8 = scmp.lt.u32.totalorder %s378_s9, %s373_s6 }
  0x1a   : > { %p382_p9 = scmp.lt.u32.totalorder %s373_s6, %s554_s29 }
  0x1b   : > { %p377_p7 = pneg %p376_p4  ;;  %p381_p10 = por %p380_p8, %p379_p5 }
  0x1d   : > { %p383_p0 = por %p382_p9, %p381_p10 }
  0x1f   : > { %p384_p1 = pnand %p383_p0, %p377_p7 }
  0x21   : > { %387 = shalt.err (!%p384_p1)
}
  0x22   : > { %s388_s17 = scalar_lea.vmem %s562_s3, 128  ;;  %s471_s18 = smov [#allocation4]  }
  0x23   : > { %p389_p2 = scmp.ne.s32.totalorder %s562_s3, %s388_s17  ;;  %s393_s20 = sshll.u32 %s471_s18, 4  ;;  %s394_s20 = int_to_ptr.vmem [resolvable:$false] %s393_s20 }
  0x24   : > { %s395_s24 = scalar_lea.vmem %s394_s20, 256  ;;  %p396_p11 = scmp.lt.s32.totalorder %s562_s3, %s394_s20 }
  0x25   : > { %p391_p4 = pnand %p389_p2, %p375_p3  ;;  %p397_p5 = scmp.lt.s32.totalorder %s395_s24, %s388_s17 }
  0x27   : > { %p392_p12 = pneg %p391_p4  ;;  %p398_p8 = por %p397_p5, %p396_p11 }
  0x29   : > { %p399_p9 = pnand %p398_p8, %p392_p12 }
  0x2b   : > { %402 = shalt.err (!%p399_p9)
}
  0x2c   : > { %330 = dma.hbm_to_vmem [thread:$0]  (!%p558_p13), %s554_s29, 128, %s562_s3, %s90_s5  }
  0x2d   : > { %p669_p0 = scmp.lt.s32.totalorder %s469_s14, 3  ;;  %p670_p1 = scmp.ge.s32.totalorder %s469_s14, 1 }
  0x2f   : > { %p106_p3 = pnand %p670_p1, %p669_p0 }
  0x30   : > { %s596_s25 = sand.u32 (!%p106_p3), 1, %s461_s12  }
  0x31   : > { %109 = sbr.rel (%p106_p3) target bundleno = 194 (0xc2), region = 24  ;;  %s313_s26 = sshll.u32 (!%p106_p3), %s596_s25, 3 }
  0x32   : > { %s112_s27 = scalar_lea.sflag (!%p106_p3), [#allocation5], %s596_s25  ;;  %s602_s28 = scalar_lea.vmem (!%p106_p3), [#allocation4], %s313_s26 }
  0x38   : > { %448 = dma.done.wait (%p534_p6), %s112_s27, 128  }
  0x39   : > { %450 = vsyncadd (%p534_p6), %s112_s27, 4294967168  ;;  %v135_v0 = vlaneseq  ;;  %s315_s29 = sshll.u32 %s512_s0, 3  ;;  %s143_s30 = sld [smem:[#allocation3]] }
  0x3a   : > { %v139_v2 = vstv %s315_s29  ;;  %s133_s15 = scalar_lea.vmem [#allocation7], %s313_s26  ;;  %s320_s18 = sshll.u32 %s512_s0, 7 }
  0x3b   : > { %v136_v1 = vshrl.u32 %v135_v0, 7  ;;  %v138_v4 = vand.u32 127, %v135_v0  ;;  %s237_s17 = sshll.u32 %s133_s15, 4  ;;  %s618_s27 = scalar_lea.hbm %s662_s2, %s320_s18  ;;  %s613_s17 = int_to_ptr.vmem [resolvable:$true] %s237_s17 }
  0x3c   : > { %s224_s29 = scalar_lea.sflag [#allocation6], %s596_s25  ;;  %p671_p11 = scmp.ne.s32.totalorder %s666_s22, 0 }
  0x3d   : > { %v140_v3 = vadd.s32 %v139_v2, %v136_v1  ;;  %s472_s0 = smov [#allocation7]  }
  0x3e   : > { %s407_s26 = sshll.u32 %s472_s0, 4  ;;  %s408_s26 = int_to_ptr.vmem [resolvable:$false] %s407_s26 }
  0x3f   : > { %s144_s3 = sxor.u32 2654435769, %s143_s30  ;;  %v141_v5 = vmul.u32 128, %v140_v3  ;;  %s403_s30 = scalar_lea.vmem %s613_s17, 128 }
  0x40   : > { %s145_s4 = sshrl.u32 %s144_s3, 16  ;;  %p404_p6 = scmp.ne.s32.totalorder %s613_s17, %s403_s30 }
  0x41   : > { %s146_s5 = sxor.u32 %s145_s4, %s144_s3  ;;  %v142_v6 = vadd.s32 %v141_v5, %v138_v4  ;;  %p410_p7 = scmp.lt.s32.totalorder %s613_s17, %s408_s26 }
  0x42   : > { %s147_s6 = smul.u32 2146121005, %s146_s5  ;;  %p405_p12 = pnand %p404_p6, %p671_p11 }
  0x44   : > { %s148_s7 = sshrl.u32 %s147_s6, 15  ;;  %p406_p13 = pneg %p405_p12 }
  0x45   : > { %s149_s8 = sxor.u32 %s148_s7, %s147_s6 }
  0x46   : > { %s150_s9 = smul.u32 2221713035, %s149_s8 }
  0x48   : > { %s151_s10 = sshrl.u32 %s150_s9, 16 }
  0x49   : > { %s152_s21 = sxor.u32 %s151_s10, %s150_s9 }
  0x4a   : > { %v153_v7 = vstv %s152_s21 }
  0x4b   : > { %v154_v8 = vxor.u32 %v153_v7, %v142_v6  ;;  %v220_v6 = vld [vmem:[%s602_s28] sm:$0xff]  ;;  %s409_s28 = scalar_lea.vmem %s408_s26, 256 }
  0x4c   : > { %p411_p10 = scmp.lt.s32.totalorder %s409_s28, %s403_s30 }
  0x4d   : > { %v155_v9 = vshrl.u32 %v154_v8, 16 }
  0x4e   : > { %p412_p2 = por %p411_p10, %p410_p7 }
  0x4f   : > { %v156_v10 = vxor.u32 %v155_v9, %v154_v8 }
  0x50   : > { %p413_p4 = pnand %p412_p2, %p406_p13 }
  0x51   : > { %v157_v11 = vmul.u32 2146121005, %v156_v10 }
  0x53   : > { %v158_v12 = vshrl.u32 %v157_v11, 15 }
  0x55   : > { %v159_v13 = vxor.u32 %v158_v12, %v157_v11 }
  0x57   : > { %v160_v14 = vmul.u32 2221713035, %v159_v13 }
  0x59   : > { %v161_v15 = vshrl.u32 %v160_v14, 16 }
  0x5b   : > { %v162_v16 = vxor.u32 %v161_v15, %v160_v14 }
  0x5d   : > { %v163_v17 = vshrl.u32 %v162_v16, 9 }
  0x5f   : > { %v164_v18 = vcvt.s32.f32 %v163_v17 }
  0x61   : > { %v165_v19 = vadd.f32 0.5, %v164_v18 }
  0x63   : > { %v166_v20 = vmul.f32 1.1920929e-07, %v165_v19 }
  0x65   : > { %v167_v21 = vmul.f32 2.0, %v166_v20 }
  0x67   : > { %v316_v22 = vadd.f32 -1.0, %v167_v21 }
  0x69   : > { %v169_v23 = vsub.f32 1.0, %v316_v22  ;;  %v170_v24 = vadd.f32 1.0, %v316_v22 }
  0x6b   : > { %v171_v25 = vmul.f32 %v170_v24, %v169_v23 }
  0x6d   : > { %369 = vlog2.f32 %v171_v25 }
  0x77   : > { %v370_v26 = vpop.eup %369 }
  0x78   : > { %v173_v27 = vmul.f32 0.6931472, %v370_v26 }
  0x7a   : > { %v174_v28 = vsub.f32 0.0, %v173_v27 }
  0x7c   : > { %v317_v29 = vadd.f32 -2.5, %v174_v28  ;;  %371 = vrsqrt.f32 %v174_v28  ;;  %vm194_vm0 = vcmp.eq.f32.partialorder %v174_v28, inf  ;;  %v197_v36 = vand.u32 2147483648, %v174_v28 }
  0x7d   : > { %vm196_vm1 = vcmp.eq.f32.partialorder %v174_v28, 0.0  ;;  %vm216_vm2 = vcmp.lt.f32.partialorder %v174_v28, 5.0 }
  0x7e   : > { %v176_v30 = vmul.f32 2.8102264e-08, %v317_v29 }
  0x80   : > { %v177_v31 = vadd.f32 3.4327394e-07, %v176_v30 }
  0x82   : > { %v178_v32 = vmul.f32 %v317_v29, %v177_v31 }
  0x84   : > { %v179_v33 = vadd.f32 -3.5233877e-06, %v178_v32 }
  0x86   : > { %v372_v34 = vpop.eup %371  ;;  %v180_v35 = vmul.f32 %v317_v29, %v179_v33 }
  0x87   : > { %v193_v37 = vmul.f32 %v372_v34, %v174_v28 }
  0x88   : > { %v181_v38 = vadd.f32 -4.3915065e-06, %v180_v35 }
  0x89   : > { %v195_v39 = vsel %vm194_vm0, %v174_v28, %v193_v37 }
  0x8a   : > { %v182_v40 = vmul.f32 %v317_v29, %v181_v38  ;;  %v198_v41 = vsel %vm196_vm1, %v197_v36, %v195_v39 }
  0x8b   : > { %v318_v42 = vadd.f32 -3.0, %v198_v41 }
  0x8c   : > { %v183_v43 = vadd.f32 0.00021858087, %v182_v40 }
  0x8d   : > { %v200_v44 = vmul.f32 -0.00020021426, %v318_v42 }
  0x8e   : > { %v184_v45 = vmul.f32 %v317_v29, %v183_v43 }
  0x8f   : > { %v201_v46 = vadd.f32 0.00010095056, %v200_v44 }
  0x90   : > { %v185_v47 = vadd.f32 -0.001253725, %v184_v45 }
  0x91   : > { %v202_v48 = vmul.f32 %v318_v42, %v201_v46 }
  0x92   : > { %v186_v50 = vmul.f32 %v317_v29, %v185_v47 }
  0x93   : > { %v203_v49 = vadd.f32 0.0013493432, %v202_v48 }
  0x94   : > { %v187_v53 = vadd.f32 -0.0041776816, %v186_v50 }
  0x95   : > { %v204_v51 = vmul.f32 %v318_v42, %v203_v49 }
  0x96   : > { %v188_v56 = vmul.f32 %v317_v29, %v187_v53 }
  0x97   : > { %v205_v52 = vadd.f32 -0.0036734284, %v204_v51 }
  0x98   : > { %v189_v59 = vadd.f32 0.24664073, %v188_v56 }
  0x99   : > { %v206_v54 = vmul.f32 %v318_v42, %v205_v52 }
  0x9a   : > { %v190_v62 = vmul.f32 %v317_v29, %v189_v59 }
  0x9b   : > { %v207_v55 = vadd.f32 0.0057395077, %v206_v54 }
  0x9c   : > { %v191_v1 = vadd.f32 1.5014094, %v190_v62 }
  0x9d   : > { %v208_v57 = vmul.f32 %v318_v42, %v207_v55 }
  0x9f   : > { %v209_v58 = vadd.f32 -0.0076224613, %v208_v57 }
  0xa1   : > { %v210_v60 = vmul.f32 %v318_v42, %v209_v58 }
  0xa3   : > { %v211_v61 = vadd.f32 0.0094388705, %v210_v60 }
  0xa5   : > { %v212_v63 = vmul.f32 %v318_v42, %v211_v61 }
  0xa7   : > { %v213_v0 = vadd.f32 1.001674, %v212_v63 }
  0xa9   : > { %v214_v2 = vmul.f32 %v318_v42, %v213_v0 }
  0xab   : > { %v215_v3 = vadd.f32 2.8329768, %v214_v2 }
  0xad   : > { %v217_v4 = vsel %vm216_vm2, %v191_v1, %v215_v3 }
  0xae   : > { %v218_v5 = vmul.f32 %v316_v22, %v217_v4 }
  0xb0   : > { %v219_v7 = vmul.f32 1.4142135, %v218_v5 }
  0xb2   : > { %v221_v8 = vadd.f32 %v220_v6, %v219_v7 }
  0xb4   : > { %222 = vst [vmem:[%s133_s15] sm:$0xff] %v221_v8 }
  0xb5   : > { %416 = shalt.err (!%p413_p4)
}
  0xb6   : > { %s417_s25 = scalar_lea.hbm %s618_s27, 128  ;;  %s421_s5 = scalar_lea.hbm %s662_s2, 256 }
  0xb7   : > { %p418_p5 = scmp.ne.s32.totalorder %s618_s27, %s417_s25  ;;  %p422_p0 = scmp.lt.u32.totalorder %s618_s27, %s662_s2 }
  0xb8   : > { %p423_p1 = scmp.lt.u32.totalorder %s421_s5, %s417_s25  ;;  %p425_p6 = scmp.lt.u32.totalorder %s417_s25, %s618_s27 }
  0xb9   : > { %p419_p8 = pnand %p418_p5, %p671_p11 }
  0xba   : > { %p424_p3 = por %p423_p1, %p422_p0 }
  0xbb   : > { %p420_p9 = pneg %p419_p8 }
  0xbc   : > { %p426_p12 = por %p425_p6, %p424_p3 }
  0xbe   : > { %p427_p13 = pnand %p426_p12, %p420_p9 }
  0xc0   : > { %430 = shalt.err (!%p427_p13)
}
  0xc1   : > { %325 = dma.vmem_to_hbm [thread:$0]  (%p671_p11), %s613_s17, 128, %s618_s27, %s224_s29  }
  0xc2 PF: > { %s249_s8 = sand.u32 1, %s457_s11   ;;  %p672_p7 = scmp.ne.s32.totalorder %s667_s23, 0 }
  0xc3   : > { %p673_p10 = scmp.ge.s32.totalorder %s469_s14, 2  ;;  %s250_s9 = scalar_lea.sflag [#allocation6], %s249_s8 }
  0xc5   : > { %p332_p2 = pnand %p673_p10, %p672_p7 }
  0xc7   : > { %452 = dma.done.wait (!%p332_p2), %s250_s9, 128  }
  0xc8   : > { %454 = vsyncadd (!%p332_p2), %s250_s9, 4294967168  ;;  %p16_p4 = scmp.ge.s32.totalorder %s516_s16, 4   ;;  %s674_s11 = smov %s461_s12 }
  0xc9   : > { %s675_s12 = smov %s465_s13  ;;  %s676_s13 = smov %s528_s19 }
  0xca   : > { %s677_s14 = smov %s516_s16  ;;  %18 = sbr.rel (!%p16_p4) target bundleno = 7 (0x7), region = 69 }
  0xd1   :  { %255 = vsyncpa [#allocation5], 1 }
  0xd2   :  { %257 = vsyncpa [#allocation5 + $0x1], 1 }
  0xd3   :  { %258 = vsyncpa [#allocation6], 1 }
  0xd4   :  { %260 = vsyncpa [#allocation6 + $0x1], 1 }

</bundles_post_ra>
